<compile_context>
chip_gen: v7x
topology: tpu7x:2x2x1
jax: 0.10.0
libtpu: 0.0.40
codegen_flags: <defaults>
</compile_context>

<pallas_src>
import jax
import jax.numpy as jnp
from jax import lax
from jax.experimental import pallas as pl
from jax.experimental.pallas import tpu as pltpu

_EPS = 1e-6
_MIB = 1024 * 1024


# ----------------------------------- kernels -----------------------------------
def ada_emb_kernel(silu_ref, w_ref, b_ref, o_ref):
    # silu_ref: (B, E)    silu(cond), bf16, resident across the 6-step grid
    # w_ref:    (1, E, E) one E-wide chunk of the (pre-transposed) linear weight, bf16
    # b_ref:    (1, 1, E) matching bias chunk, f32
    # o_ref:    (1, B, E) one of the 6 modulation vectors
    acc = jnp.dot(silu_ref[...], w_ref[0],
                  preferred_element_type=jnp.float32)        # bf16 MXU pass, f32 acc
    o_ref[0] = (acc + b_ref[0].astype(jnp.float32)).astype(o_ref.dtype)


def ada_modulate_kernel(emb_ref, x_ref, o_ref):
    # emb_ref: (2, B, E)  rows 0/1 = shift_msa / scale_msa, resident for the whole grid
    # x_ref:   (1, TS, E) tile of the sequence for one batch element
    # o_ref:   (1, TS, E)
    b = pl.program_id(0)
    x = x_ref[0].astype(jnp.float32)                          # (TS, E)
    mean = jnp.mean(x, axis=-1, keepdims=True)
    xc = x - mean
    var = jnp.mean(xc * xc, axis=-1, keepdims=True)
    xn = xc * lax.rsqrt(var + _EPS)                           # LayerNorm, no affine (EUP rsqrt)
    shift = emb_ref[0, pl.ds(b, 1), :].astype(jnp.float32)    # (1, E)
    scale1 = 1.0 + emb_ref[1, pl.ds(b, 1), :].astype(jnp.float32)
    o_ref[0] = (xn * scale1 + shift).astype(o_ref.dtype)      # single FMA tail


# ------------------------------ parameter prep ----------------------------------
def prepare_ada_ln_zero_params(weight, bias, compute_dtype=jnp.bfloat16):
    """One-time (parameter-setup) transform of the torch nn.Linear params.

    weight: (6E, E) torch layout; bias: (6E,).
    Returns w6 (6, E_in, E_out) in compute_dtype and b6 (6, 1, E) in f32.
    Do this ONCE when loading parameters, not on the forward path."""
    out6, E = weight.shape
    assert out6 == 6 * E
    w6 = jnp.transpose(weight.reshape(6, E, E), (0, 2, 1)).astype(compute_dtype)
    b6 = bias.reshape(6, 1, E).astype(jnp.float32)
    return w6, b6


# ----------------------------------- helpers ------------------------------------
def _vmem_limit(working_bytes):
    # Actual working set + headroom for compiler scratch / semaphores.
    # Never request the full physical VMEM (v7x has only 64 MiB per TensorCore).
    return int(min(48 * _MIB, max(8 * _MIB, working_bytes + 4 * _MIB)))


def _pick_s_tile(S, E, itemsize, budget_bytes=24 * _MIB, cap=1024):
    """Largest S-tile whose double-buffered in+out working set fits the byte budget."""
    per_row = 4 * E * itemsize                      # x tile + out tile, double-buffered
    max_ts = int(max(8, min(cap, budget_bytes // max(1, per_row))))
    if S <= max_ts:
        return S
    best_any, best_mult8 = 1, 0
    d = 1
    while d * d <= S:
        if S % d == 0:
            for cand in (d, S // d):
                if cand <= max_ts:
                    if cand > best_any:
                        best_any = cand
                    if cand % 8 == 0 and cand > best_mult8:
                        best_mult8 = cand
        d += 1
    # TODO(synk): oddly-sized S with no good divisor falls back to a small tile; pad S upstream.
    return best_mult8 if best_mult8 else best_any


# ----------------------------------- wrapper ------------------------------------
def ada_layer_norm_zero_forward(x, conditioning_embedding, w6, b6):
    """x: (B, S, E); conditioning_embedding: (B, E);
    w6/b6: prepared params from prepare_ada_ln_zero_params.
    Returns (x_mod, gate_msa, shift_mlp, scale_mlp, gate_mlp)."""
    B, S, E = x.shape
    wbytes = jnp.dtype(w6.dtype).itemsize
    xbytes = jnp.dtype(x.dtype).itemsize

    # SiLU once (tiny B x E op), cast to the MXU streaming dtype.
    c = conditioning_embedding.astype(jnp.float32)
    silu = (c * jax.nn.sigmoid(c)).astype(w6.dtype)

    # ---- kernel 1: emb = silu(cond) @ W^T + b, streamed as 6 lane-dense chunks ----
    emb_work = (2 * E * E * wbytes          # weight chunk, double-buffered
                + 2 * B * E * wbytes        # silu (resident, conservatively x2)
                + 2 * E * 4                 # bias chunk
                + 2 * B * E * xbytes)       # output chunk
    emb = pl.pallas_call(
        ada_emb_kernel,
        out_shape=jax.ShapeDtypeStruct((6, B, E), x.dtype),
        grid_spec=pltpu.PrefetchScalarGridSpec(
            num_scalar_prefetch=0,
            grid=(6,),
            in_specs=[
                pl.BlockSpec((B, E), lambda n: (0, 0)),        # silu(cond), resident
                pl.BlockSpec((1, E, E), lambda n: (n, 0, 0)),  # weight chunk (bf16)
                pl.BlockSpec((1, 1, E), lambda n: (n, 0, 0)),  # bias chunk
            ],
            out_specs=pl.BlockSpec((1, B, E), lambda n: (n, 0, 0)),
        ),
        compiler_params=pltpu.CompilerParams(
            dimension_semantics=("parallel",),
            vmem_limit_bytes=_vmem_limit(emb_work)),
    )(silu, w6, b6)
    # chunk order: 0 shift_msa, 1 scale_msa, 2 gate_msa, 3 shift_mlp, 4 scale_mlp, 5 gate_mlp

    # ---- kernel 2: LayerNorm + modulation, S-tiled, emb fed in directly ----
    ts = _pick_s_tile(S, E, xbytes)
    mod_work = (4 * ts * E * xbytes          # x tile + out tile, double-buffered
                + 2 * 2 * B * E * xbytes)    # resident shift/scale slab
    x_mod = pl.pallas_call(
        ada_modulate_kernel,
        out_shape=jax.ShapeDtypeStruct((B, S, E), x.dtype),
        grid_spec=pltpu.PrefetchScalarGridSpec(
            num_scalar_prefetch=0,
            grid=(B, S // ts),
            in_specs=[
                # rows 0..1 of emb (shift_msa, scale_msa), resident for the whole grid
                pl.BlockSpec((2, B, E), lambda b, s: (0, 0, 0)),
                pl.BlockSpec((1, ts, E), lambda b, s: (b, s, 0)),
            ],
            out_specs=pl.BlockSpec((1, ts, E), lambda b, s: (b, s, 0)),
        ),
        compiler_params=pltpu.CompilerParams(
            dimension_semantics=("parallel", "parallel"),
            vmem_limit_bytes=_vmem_limit(mod_work)),
    )(emb, x)

    return x_mod, emb[2], emb[3], emb[4], emb[5]


if __name__ == "__main__":
    # Small config consistent with the module: batch=2, seq=8, hidden=32.
    B, S, E = 2, 8, 32
    key = jax.random.PRNGKey(0)
    kx, kc, kw, kb = jax.random.split(key, 4)

    x = jax.random.normal(kx, (B, S, E), dtype=jnp.float32)
    cond = jax.random.normal(kc, (B, E), dtype=jnp.float32)
    weight = jax.random.normal(kw, (6 * E, E), dtype=jnp.float32) * 0.02   # nn.Linear weight
    bias = jax.random.normal(kb, (6 * E,), dtype=jnp.float32) * 0.02       # nn.Linear bias

    # Parameter prep happens once, outside the forward path.
    w6, b6 = prepare_ada_ln_zero_params(weight, bias, compute_dtype=jnp.bfloat16)

    fwd = jax.jit(ada_layer_norm_zero_forward)
    outs = fwd(x, cond, w6, b6)
    outs = jax.block_until_ready(outs)
    x_mod, gate_msa, shift_mlp, scale_mlp, gate_mlp = outs

    # ----------------- pure-JAX f32 reference -----------------
    silu_ref = cond * jax.nn.sigmoid(cond)
    emb_ref = jnp.einsum("be,fe->bf", silu_ref, weight,
                         precision=jax.lax.Precision.HIGHEST) + bias        # (B, 6E)
    chunks = [emb_ref[:, i * E:(i + 1) * E] for i in range(6)]
    shift_msa_r, scale_msa_r, gate_msa_r, shift_mlp_r, scale_mlp_r, gate_mlp_r = chunks
    mean = x.mean(-1, keepdims=True)
    var = ((x - mean) ** 2).mean(-1, keepdims=True)
    xn = (x - mean) / jnp.sqrt(var + _EPS)
    x_ref = xn * (1.0 + scale_msa_r[:, None, :]) + shift_msa_r[:, None, :]

    # Tolerances loosened vs a pure-f32 path: the linear weight/activations stream in bf16
    # (accumulation stays f32), so error is bounded by input rounding.
    ATOL, RTOL = 5e-3, 1e-2
    assert x_mod.shape == (B, S, E)
    assert gate_msa.shape == (B, E)
    assert jnp.allclose(x_mod, x_ref, atol=ATOL, rtol=RTOL)
    assert jnp.allclose(gate_msa, gate_msa_r, atol=ATOL, rtol=RTOL)
    assert jnp.allclose(shift_mlp, shift_mlp_r, atol=ATOL, rtol=RTOL)
    assert jnp.allclose(scale_mlp, scale_mlp_r, atol=ATOL, rtol=RTOL)
    assert jnp.allclose(gate_mlp, gate_mlp_r, atol=ATOL, rtol=RTOL)

    print("KERNEL_OK")
</pallas_src>

<mosaic_0001>
module attributes {stable_mosaic.version = 11 : i64} {
  func.func @ada_modulate_kernel(%arg0: i32, %arg1: i32, %arg2: memref<2x2x32xf32, #tpu.memory_space<vmem>>, %arg3: memref<1x8x32xf32, #tpu.memory_space<vmem>>, %arg4: memref<1x8x32xf32, #tpu.memory_space<vmem>>) attributes {dimension_semantics = [#tpu.dimension_semantics<parallel>, #tpu.dimension_semantics<parallel>], iteration_bounds = array<i64: 2, 1>, scalar_prefetch = 0 : i64, scratch_operands = 0 : i64, tpu.core_type = #tpu.core_type<tc>, window_params = [{transform_indices = @transform_0, window_bounds = array<i64: 2, 2, 32>}, {transform_indices = @transform_1, window_bounds = array<i64: 1, 8, 32>}, {transform_indices = @transform_2, window_bounds = array<i64: 1, 8, 32>}]} {
    %c0 = arith.constant 0 : index
    %c0_0 = arith.constant 0 : index
    %c0_1 = arith.constant 0 : index
    %0 = vector.load %arg3[%c0, %c0_0, %c0_1] : memref<1x8x32xf32, #tpu.memory_space<vmem>>, vector<1x8x32xf32>
    %1 = vector.shape_cast %0 : vector<1x8x32xf32> to vector<8x32xf32>
    %cst = arith.constant dense<0.000000e+00> : vector<8xf32>
    %2 = vector.multi_reduction <add>, %1, %cst [1] : vector<8x32xf32> to vector<8xf32>
    %3 = vector.shape_cast %2 : vector<8xf32> to vector<8x1xf32>
    %cst_2 = arith.constant 3.200000e+01 : f32
    %4 = vector.broadcast %cst_2 : f32 to vector<8x1xf32>
    %5 = arith.divf %3, %4 : vector<8x1xf32>
    %6 = vector.broadcast %5 : vector<8x1xf32> to vector<8x32xf32>
    %7 = arith.subf %1, %6 : vector<8x32xf32>
    %8 = arith.mulf %7, %7 : vector<8x32xf32>
    %cst_3 = arith.constant dense<0.000000e+00> : vector<8xf32>
    %9 = vector.multi_reduction <add>, %8, %cst_3 [1] : vector<8x32xf32> to vector<8xf32>
    %10 = vector.shape_cast %9 : vector<8xf32> to vector<8x1xf32>
    %cst_4 = arith.constant 3.200000e+01 : f32
    %11 = vector.broadcast %cst_4 : f32 to vector<8x1xf32>
    %12 = arith.divf %10, %11 : vector<8x1xf32>
    %cst_5 = arith.constant 9.99999997E-7 : f32
    %13 = vector.broadcast %cst_5 : f32 to vector<8x1xf32>
    %14 = arith.addf %12, %13 : vector<8x1xf32>
    %15 = math.rsqrt %14 : vector<8x1xf32>
    %16 = vector.broadcast %15 : vector<8x1xf32> to vector<8x32xf32>
    %17 = arith.mulf %7, %16 : vector<8x32xf32>
    %c0_6 = arith.constant 0 : index
    %18 = arith.index_cast %arg0 : i32 to index
    %c0_7 = arith.constant 0 : index
    %19 = vector.load %arg2[%c0_6, %18, %c0_7] : memref<2x2x32xf32, #tpu.memory_space<vmem>>, vector<1x1x32xf32>
    %20 = vector.shape_cast %19 : vector<1x1x32xf32> to vector<1x32xf32>
    %c1 = arith.constant 1 : index
    %21 = arith.index_cast %arg0 : i32 to index
    %c0_8 = arith.constant 0 : index
    %22 = vector.load %arg2[%c1, %21, %c0_8] : memref<2x2x32xf32, #tpu.memory_space<vmem>>, vector<1x1x32xf32>
    %23 = vector.shape_cast %22 : vector<1x1x32xf32> to vector<1x32xf32>
    %cst_9 = arith.constant 1.000000e+00 : f32
    %24 = vector.broadcast %cst_9 : f32 to vector<1x32xf32>
    %25 = arith.addf %24, %23 : vector<1x32xf32>
    %26 = vector.broadcast %25 : vector<1x32xf32> to vector<8x32xf32>
    %27 = arith.mulf %17, %26 : vector<8x32xf32>
    %28 = vector.broadcast %20 : vector<1x32xf32> to vector<8x32xf32>
    %29 = arith.addf %27, %28 : vector<8x32xf32>
    %c0_10 = arith.constant 0 : index
    %c0_11 = arith.constant 0 : index
    %c0_12 = arith.constant 0 : index
    %30 = vector.load %arg4[%c0_10, %c0_11, %c0_12] : memref<1x8x32xf32, #tpu.memory_space<vmem>>, vector<1x8x32xf32>
    %31 = vector.shape_cast %30 : vector<1x8x32xf32> to vector<8x32xf32>
    %32 = vector.shape_cast %29 : vector<8x32xf32> to vector<1x8x32xf32>
    tpu.vector_store %arg4[%c0_10, %c0_11, %c0_12], %32 {strides = array<i32>} : memref<1x8x32xf32, #tpu.memory_space<vmem>>, vector<1x8x32xf32>,
    return
  }
  func.func @transform_0(%arg0: i32, %arg1: i32) -> (i32, i32, i32) {
    %c0_i32 = arith.constant 0 : i32
    %c0_i32_0 = arith.constant 0 : i32
    %c0_i32_1 = arith.constant 0 : i32
    %c0_i32_2 = arith.constant 0 : i32
    return %c0_i32, %c0_i32_0, %c0_i32_1 : i32, i32, i32
  }
  func.func @transform_1(%arg0: i32, %arg1: i32) -> (i32, i32, i32) {
    %c0_i32 = arith.constant 0 : i32
    %c0_i32_0 = arith.constant 0 : i32
    return %arg0, %arg1, %c0_i32 : i32, i32, i32
  }
  func.func @transform_2(%arg0: i32, %arg1: i32) -> (i32, i32, i32) {
    %c0_i32 = arith.constant 0 : i32
    %c0_i32_0 = arith.constant 0 : i32
    return %arg0, %arg1, %c0_i32 : i32, i32, i32
  }
}

module attributes {stable_mosaic.version = 11 : i64} {
  func.func @ada_emb_kernel(%arg0: i32, %arg1: memref<2x32xbf16, #tpu.memory_space<vmem>>, %arg2: memref<1x32x32xbf16, #tpu.memory_space<vmem>>, %arg3: memref<1x1x32xf32, #tpu.memory_space<vmem>>, %arg4: memref<1x2x32xf32, #tpu.memory_space<vmem>>) attributes {dimension_semantics = [#tpu.dimension_semantics<parallel>], iteration_bounds = array<i64: 6>, scalar_prefetch = 0 : i64, scratch_operands = 0 : i64, tpu.core_type = #tpu.core_type<tc>, window_params = [{pipeline_mode = #tpu.pipeline_mode<synchronous>, transform_indices = @transform_0, window_bounds = array<i64: 2, 32>}, {transform_indices = @transform_1, window_bounds = array<i64: 1, 32, 32>}, {transform_indices = @transform_2, window_bounds = array<i64: 1, 1, 32>}, {transform_indices = @transform_3, window_bounds = array<i64: 1, 2, 32>}]} {
    %c0 = arith.constant 0 : index
    %c0_0 = arith.constant 0 : index
    %0 = vector.load %arg1[%c0, %c0_0] : memref<2x32xbf16, #tpu.memory_space<vmem>>, vector<2x32xbf16>
    %c0_1 = arith.constant 0 : index
    %c0_2 = arith.constant 0 : index
    %c0_3 = arith.constant 0 : index
    %1 = vector.load %arg2[%c0_1, %c0_2, %c0_3] : memref<1x32x32xbf16, #tpu.memory_space<vmem>>, vector<1x32x32xbf16>
    %2 = vector.shape_cast %1 : vector<1x32x32xbf16> to vector<32x32xbf16>
    %cst = arith.constant dense<0.000000e+00> : vector<2x32xf32>
    %3 = tpu.matmul %0, %2, %cst {dimension_numbers = #tpu.dot_dimension_numbers<[1], [0], [0], [1], [0, 0, 1, 1], [], []>} : vector<2x32xbf16>, vector<32x32xbf16>, vector<2x32xf32> -> vector<2x32xf32>
    %c0_4 = arith.constant 0 : index
    %c0_5 = arith.constant 0 : index
    %c0_6 = arith.constant 0 : index
    %4 = vector.load %arg3[%c0_4, %c0_5, %c0_6] : memref<1x1x32xf32, #tpu.memory_space<vmem>>, vector<1x1x32xf32>
    %5 = vector.shape_cast %4 : vector<1x1x32xf32> to vector<1x32xf32>
    %6 = vector.broadcast %5 : vector<1x32xf32> to vector<2x32xf32>
    %7 = arith.addf %3, %6 : vector<2x32xf32>
    %c0_7 = arith.constant 0 : index
    %c0_8 = arith.constant 0 : index
    %c0_9 = arith.constant 0 : index
    %8 = vector.load %arg4[%c0_7, %c0_8, %c0_9] : memref<1x2x32xf32, #tpu.memory_space<vmem>>, vector<1x2x32xf32>
    %9 = vector.shape_cast %8 : vector<1x2x32xf32> to vector<2x32xf32>
    %10 = vector.shape_cast %7 : vector<2x32xf32> to vector<1x2x32xf32>
    tpu.vector_store %arg4[%c0_7, %c0_8, %c0_9], %10 {strides = array<i32>} : memref<1x2x32xf32, #tpu.memory_space<vmem>>, vector<1x2x32xf32>,
    return
  }
  func.func @transform_0(%arg0: i32) -> (i32, i32) {
    %c0_i32 = arith.constant 0 : i32
    %c0_i32_0 = arith.constant 0 : i32
    %c0_i32_1 = arith.constant 0 : i32
    return %c0_i32, %c0_i32_0 : i32, i32
  }
  func.func @transform_1(%arg0: i32) -> (i32, i32, i32) {
    %c0_i32 = arith.constant 0 : i32
    %c0_i32_0 = arith.constant 0 : i32
    %c0_i32_1 = arith.constant 0 : i32
    return %arg0, %c0_i32, %c0_i32_0 : i32, i32, i32
  }
  func.func @transform_2(%arg0: i32) -> (i32, i32, i32) {
    %c0_i32 = arith.constant 0 : i32
    %c0_i32_0 = arith.constant 0 : i32
    %c0_i32_1 = arith.constant 0 : i32
    return %arg0, %c0_i32, %c0_i32_0 : i32, i32, i32
  }
  func.func @transform_3(%arg0: i32) -> (i32, i32, i32) {
    %c0_i32 = arith.constant 0 : i32
    %c0_i32_0 = arith.constant 0 : i32
    %c0_i32_1 = arith.constant 0 : i32
    return %arg0, %c0_i32, %c0_i32_0 : i32, i32, i32
  }
}

</mosaic_0001>

<bundles_post_ra>
// kernel: ada_layer_norm_zero_forward.3
= control target key start
LH: loop header
LB: loop body
LE: loop exit
PB: predicated region body
PF: predicated region fallthrough
CT: control target
= control target key end

     0   :  { %7 = vsyncpa [#allocation3], 0  ;;  %s571_s0 = inlined_call_operand.vmem [shape: f32[6,2,32], index: 0, kind: input, shape index: {}]   ;;  %s572_s1 = inlined_call_operand.vmem [shape: f32[2,8,32], index: 1, kind: input, shape index: {}]   ;;  %s573_s2 = inlined_call_operand.hbm [shape: f32[2,8,32], index: 2, kind: output, shape index: {}]  }
   0x1   :  { %9 = vsyncpa [#allocation3 + $0x1], 0  ;;  %s452_s9 = smov 0   ;;  %s454_s10 = smov 0  }
   0x2   :  { %s456_s11 = smov 0   ;;  %s458_s12 = smov 0  }
   0x3   :  { %s460_s13 = smov 0   ;;  %s462_s14 = smov 0  }
   0x4 LB: > { %s286_s15 = sadd.s32 4294967295, %s434_s14   ;;  %s287_s16 = sadd.s32 4294967294, %s434_s14   ;;  %s434_s14 = sphi %s462_s14, %s15_s14   ;;  %s430_s13 = sphi %s460_s13, %s580_s13   ;;  %s426_s12 = sphi %s458_s12, %s579_s12   ;;  %s422_s11 = sphi %s456_s11, %s578_s11   ;;  %s418_s10 = sphi %s454_s10, %s577_s10   ;;  %s414_s9 = sphi %s452_s9, %s576_s9  }
   0x5   : > { %s27_s17 = sadd.s32 1, %s430_s13  ;;  %s85_s18 = sadd.s32 1, %s422_s11 }
   0x6   : > { %p29_p0 = scmp.ge.s32.totalorder %s27_s17, 2  ;;  %p95_p1 = scmp.ne.s32.totalorder %s422_s11, %s418_s10 }
   0x7   : > { %p96_p2 = scmp.eq.s32.totalorder %s286_s15, 1  ;;  %p101_p3 = scmp.ne.s32.totalorder %s418_s10, %s414_s9 }
   0x8   : > { %s582_s17 = smov (%p29_p0, %s27_s17), 0  ;;  %p102_p5 = scmp.eq.s32.totalorder %s287_s16, 1 }
   0x9   : > { %p492_p4 = por %p96_p2, %p95_p1  ;;  %s80_s20 = ssub.s32 %s430_s13, %s582_s17 }
   0xa   : > { %p290_p6 = scmp.ge.s32.totalorder %s434_s14, 1  ;;  %p83_p7 = scmp.eq.s32.totalorder %s80_s20, 0 }
   0xb   : > { %p499_p8 = por %p102_p5, %p101_p3  ;;  %p133_p9 = scmp.lt.s32.totalorder %s434_s14, 3 }
   0xc   : > { %s505_s22 = scalar_select %p83_p7, %s422_s11, %s85_s18  }
   0xd   : > { %p134_p10 = pnand %p290_p6, %p133_p9 }
   0xe   : > { %p157_p11 = scmp.lt.s32.totalorder (!%p134_p10), %s426_s12, 1  ;;  %vm165_vm0 = vcmask (!%p134_p10), 261120   ;;  %v186_v9 = vlaneseq (!%p134_p10)  ;;  %s180_s30 = scalar_lea.vmem (!%p134_p10), %s571_s0, %s426_s12 }
   0xf   : > { %137 = sbr.rel (%p134_p10) target bundleno = 354 (0x162), region = 28  ;;  %v293_v12 = vld [vmem:[%s180_s30 + $0x2] sm:$0x1] (!%p134_p10)  ;;  %s154_s3 = sand.u32 (!%p134_p10), 1, %s418_s10   ;;  %v294_v18 = vld [vmem:[%s180_s30] ss:$0 sm:$0xff] (!%p134_p10) }
  0x10   : > { %v187_v11 = vshrl.u32 (!%p134_p10), %v186_v9, 7  ;;  %v185_v13 = vadd.f32 (!%p134_p10), 1.0, %v293_v12  ;;  %s291_s4 = sshll.u32 (!%p134_p10), %s154_s3, 3  ;;  %s296_s5 = sshll.u32 (!%p134_p10), %s426_s12, 7 }
  0x11   : > { %s156_s6 = scalar_lea.vmem (!%p134_p10), [#allocation2], %s291_s4  ;;  %s523_s16 = scalar_lea.hbm (!%p134_p10), %s573_s2, %s296_s5 }
  0x12   : > { %v188_v14 = vsub.s32 (!%p134_p10), 0, %v187_v11  ;;  %s212_s7 = sshll.u32 (!%p134_p10), %s156_s6, 4  ;;  %s198_s18 = scalar_lea.sflag (!%p134_p10), [#allocation3], %s154_s3  ;;  %s525_s7 = int_to_ptr.vmem [resolvable:$true] %s212_s7 }
  0x13   : > { %s356_s20 = scalar_lea.vmem (!%p134_p10), %s525_s7, 128 }
  0x14   : > { %v189_v15 = vrot.slane (!%p134_p10), %v185_v13, %v188_v14  ;;  %p357_p12 = scmp.ne.s32.totalorder (!%p134_p10), %s525_s7, %s356_s20 }
  0x16   : > { %s158_s23 = scalar_select %p157_p11, %s426_s12, 1 }
  0x17   : > { %p358_p13 = pnand %p357_p12, %p492_p4  ;;  %s436_s12 = smov [#allocation2]  }
  0x18   : > { %s292_s24 = sshll.u32 %s158_s23, 3  ;;  %s360_s23 = sshll.u32 %s436_s12, 4  ;;  %s361_s23 = int_to_ptr.vmem [resolvable:$false] %s360_s23 }
  0x19   : > { %s163_s27 = scalar_lea.vmem %s572_s1, %s292_s24  ;;  %p359_p0 = pneg %p358_p13 }
  0x1a   : > { %v164_v0 = vld [vmem:[%s163_s27] sm:$0xff]  ;;  %s362_s24 = scalar_lea.vmem %s361_s23, 256  ;;  %p363_p1 = scmp.lt.s32.totalorder %s525_s7, %s361_s23 }
  0x1b   : > { %v166_v1 = vsel %vm165_vm0, %v164_v0, 0.0  ;;  %p364_p2 = scmp.lt.s32.totalorder %s362_s24, %s356_s20 }
  0x1c   : > { %167 = vadd.xlane.f32.xlu0 %v166_v1 }
  0x1d   : > { %p365_p3 = por %p364_p2, %p363_p1 }
  0x1f   : > { %p366_p5 = pnand %p365_p3, %p359_p0 }
  0xa9   : > { %v168_v2 = vpop.xlane.xlu0 %167 }
  0xaa   : > { %v170_v3 = vmul.f32 0.03125, %v168_v2 }
  0xac   : > { %v171_v4 = vsub.f32 %v164_v0, %v170_v3 }
  0xae   : > { %v172_v5 = vmul.f32 %v171_v4, %v171_v4 }
  0xb0   : > { %v173_v6 = vsel %vm165_vm0, %v172_v5, 0.0 }
  0xb1   : > { %174 = vadd.xlane.f32.xlu0 %v173_v6 }
 0x13e   : > { %v175_v7 = vpop.xlane.xlu0 %174 }
 0x13f   : > { %v176_v8 = vmul.f32 0.03125, %v175_v7 }
 0x141   : > { %v177_v10 = vadd.f32 1e-06, %v176_v8 }
 0x143   : > { %354 = vrsqrt.f32 %v177_v10 }
 0x14d   : > { %v355_v16 = vpop.eup %354 }
 0x14e   : > { %v179_v17 = vmul.f32 %v355_v16, %v171_v4 }
 0x150   : > { %v190_v19 = vmul.f32 %v189_v15, %v179_v17 }
 0x152   : > { %v195_v20 = vadd.f32 %v294_v18, %v190_v19 }
 0x154   : > { %196 = vst.msk [vmem:[%s156_s6] sm:$0xff] %vm165_vm0, %v195_v20 }
 0x155   : > { %369 = shalt.err (!%p366_p5)
}
 0x156   : > { %s370_s25 = scalar_lea.hbm %s523_s16, 128  ;;  %s374_s28 = scalar_lea.hbm %s573_s2, 256 }
 0x157   : > { %p371_p6 = scmp.ne.s32.totalorder %s523_s16, %s370_s25  ;;  %p375_p10 = scmp.lt.u32.totalorder %s523_s16, %s573_s2 }
 0x158   : > { %p376_p11 = scmp.lt.u32.totalorder %s374_s28, %s370_s25  ;;  %p378_p13 = scmp.lt.u32.totalorder %s370_s25, %s523_s16 }
 0x159   : > { %p372_p7 = pnand %p371_p6, %p492_p4 }
 0x15a   : > { %p377_p12 = por %p376_p11, %p375_p10 }
 0x15b   : > { %p373_p9 = pneg %p372_p7 }
 0x15c   : > { %p379_p0 = por %p378_p13, %p377_p12 }
 0x15e   : > { %p380_p1 = pnand %p379_p0, %p373_p9 }
 0x160   : > { %383 = shalt.err (!%p380_p1)
}
 0x161   : > { %299 = dma.vmem_to_hbm [thread:$0]  (%p492_p4), %s525_s7, 128, %s523_s16, %s198_s18  }
 0x162 PF: > { %p305_p2 = scmp.ge.s32.totalorder %s434_s14, 2  ;;  %s224_s3 = sand.u32 1, %s414_s9  }
 0x163   : > { %s225_s4 = scalar_lea.sflag [#allocation3], %s224_s3 }
 0x164   : > { %p302_p3 = pnand %p305_p2, %p499_p8 }
 0x166   : > { %409 = dma.done.wait (!%p302_p3), %s225_s4, 128  }
 0x167   : > { %411 = vsyncadd (!%p302_p3), %s225_s4, 4294967168  ;;  %s15_s14 = sadd.s32 1, %s434_s14   ;;  %s576_s9 = smov %s418_s10 }
 0x168   : > { %p12_p5 = scmp.ge.s32.totalorder %s15_s14, 4   ;;  %s577_s10 = smov %s422_s11 }
 0x169   : > { %s578_s11 = smov %s505_s22  ;;  %s579_s12 = smov %s430_s13 }
 0x16a   : > { %s580_s13 = smov %s582_s17  ;;  %14 = sbr.rel (!%p12_p5) target bundleno = 4 (0x4), region = 65 }
 0x171   :  { %230 = vsyncpa [#allocation3], 1 }
 0x172   :  { %232 = vsyncpa [#allocation3 + $0x1], 1 }

// kernel: ada_layer_norm_zero_forward.2
= control target key start
LH: loop header
LB: loop body
LE: loop exit
PB: predicated region body
PF: predicated region fallthrough
CT: control target
= control target key end

     0   :  { %8 = vsyncpa [#allocation3], 0  ;;  %s625_s0 = inlined_call_operand.vmem [shape: bf16[2,32], index: 0, kind: input, shape index: {}]   ;;  %s626_s1 = inlined_call_operand.hbm [shape: bf16[6,32,32], index: 1, kind: input, shape index: {}]   ;;  %s627_s2 = inlined_call_operand.vmem [shape: f32[6,1,32], index: 2, kind: input, shape index: {}]   ;;  %s628_s3 = inlined_call_operand.vmem [shape: f32[6,2,32], index: 3, kind: output, shape index: {}]  }
   0x1   :  { %10 = vsyncpa [#allocation3 + $0x1], 0  ;;  %s511_s12 = smov 0   ;;  %s513_s13 = smov 0  }
   0x2   :  { %s515_s14 = smov 0   ;;  %s517_s15 = smov 0  }
   0x3 LB: > { %s530_s16 = sadd.s32 4294967295, %s484_s15   ;;  %s533_s17 = sadd.s32 1, %s484_s15   ;;  %s484_s15 = sphi %s517_s15, %s635_s15   ;;  %s480_s14 = sphi %s515_s14, %s634_s14   ;;  %s476_s13 = sphi %s513_s13, %s633_s13   ;;  %s472_s12 = sphi %s511_s12, %s632_s12  }
   0x4   : > { %s41_s18 = ssub.s32 %s484_s15, %s533_s17  ;;  %s44_s19 = sadd.s32 1, %s480_s14 }
   0x5   : > { %p42_p0 = scmp.eq.s32.totalorder %s41_s18, 0  ;;  %p51_p1 = scmp.ne.s32.totalorder %s480_s14, %s476_s13 }
   0x6   : > { %p52_p2 = scmp.eq.s32.totalorder %s484_s15, 0  ;;  %p57_p3 = scmp.ne.s32.totalorder %s476_s13, %s472_s12 }
   0x7   : > { %s543_s20 = scalar_select %p42_p0, %s480_s14, %s44_s19  }
   0x8   : > { %p53_p4 = por %p52_p2, %p51_p1  ;;  %p58_p5 = scmp.eq.s32.totalorder %s530_s16, 0 }
   0x9   : > { %p381_p6 = scmp.lt.s32.totalorder %s484_s15, 6  ;;  %s136_s22 = sand.u32 1, %s480_s14  }
   0xa   : > { %p547_p7 = por %p58_p5, %p57_p3  ;;  %s351_s23 = sshll.u32 %s136_s22, 4 }
   0xb   : > { %s363_s24 = sshll.u32 %s484_s15, 8  ;;  %s140_s28 = scalar_lea.vmem [#allocation2], %s351_s23 }
   0xc   : > { %s556_s27 = scalar_lea.hbm %s626_s1, %s363_s24  ;;  %s147_s29 = sshll.u32 %s140_s28, 4  ;;  %s558_s29 = int_to_ptr.vmem [resolvable:$true] %s147_s29 }
   0xd   : > { %p560_p8 = pnand %p381_p6, %p53_p4  ;;  %s565_s4 = scalar_lea.sflag [#allocation3], %s136_s22 }
   0xe   : > { %s420_s5 = scalar_lea.hbm %s556_s27, 256  ;;  %s425_s8 = scalar_lea.hbm %s626_s1, 1536 }
   0xf   : > { %p421_p10 = scmp.ne.s32.totalorder %s556_s27, %s420_s5  ;;  %p422_p11 = pneg %p560_p8 }
  0x10   : > { %p426_p0 = scmp.lt.u32.totalorder %s556_s27, %s626_s1  ;;  %p427_p1 = scmp.lt.u32.totalorder %s425_s8, %s420_s5 }
  0x11   : > { %p423_p12 = pnand %p422_p11, %p421_p10  ;;  %p429_p3 = scmp.lt.u32.totalorder %s420_s5, %s556_s27 }
  0x12   : > { %p428_p2 = por %p427_p1, %p426_p0 }
  0x13   : > { %p424_p13 = pneg %p423_p12 }
  0x14   : > { %p430_p4 = por %p429_p3, %p428_p2 }
  0x16   : > { %p431_p5 = pnand %p430_p4, %p424_p13 }
  0x18   : > { %434 = shalt.err (!%p431_p5)
}
  0x19   : > { %s435_s11 = scalar_lea.vmem %s558_s29, 256  ;;  %s486_s12 = smov [#allocation2]  }
  0x1a   : > { %p436_p6 = scmp.ne.s32.totalorder %s558_s29, %s435_s11  ;;  %s440_s18 = sshll.u32 %s486_s12, 4  ;;  %s441_s18 = int_to_ptr.vmem [resolvable:$false] %s440_s18 }
  0x1b   : > { %s442_s19 = scalar_lea.vmem %s441_s18, 512  ;;  %p443_p9 = scmp.lt.s32.totalorder %s558_s29, %s441_s18 }
  0x1c   : > { %p438_p10 = pnand %p436_p6, %p422_p11  ;;  %p444_p0 = scmp.lt.s32.totalorder %s442_s19, %s435_s11 }
  0x1e   : > { %p439_p12 = pneg %p438_p10  ;;  %p445_p1 = por %p444_p0, %p443_p9 }
  0x20   : > { %p446_p2 = pnand %p445_p1, %p439_p12 }
  0x22   : > { %449 = shalt.err (!%p446_p2)
}
  0x23   : > { %s487_s22 = smov 64   ;;  %s488_s23 = smov 4  }
  0x24   : > { %380 = dma.hbm_to_vmem [thread:$0]  (!%p560_p8), %s556_s27, 256, %s558_s29, %s565_s4, %s487_s22, %s487_s22, %s488_s23  }
  0x25   : > { %p161_p11 = scmp.lt.s32.totalorder %s484_s15, 7  ;;  %p631_p13 = scmp.ge.s32.totalorder %s484_s15, 1 }
  0x27   : > { %p162_p3 = pnand %p631_p13, %p161_p11 }
  0x28   : > { %s167_s24 = sand.u32 (!%p162_p3), 1, %s476_s13  }
  0x29   : > { %165 = sbr.rel (%p162_p3) target bundleno = 273 (0x111), region = 32  ;;  %s355_s25 = sshll.u32 (!%p162_p3), %s167_s24, 4 }
  0x2a   : > { %s168_s26 = scalar_lea.sflag (!%p162_p3), [#allocation3], %s167_s24  ;;  %s171_s28 = scalar_lea.vmem (!%p162_p3), [#allocation2], %s355_s25 }
  0x30   : > { %467 = dma.done.wait (%p547_p7), %s168_s26, 256  }
  0x31   : > { %469 = vsyncadd (%p547_p7), %s168_s26, 4294967040  ;;  %v489_v0 = vmov 0.0   ;;  %vm490_vm0 = vmmov 0   ;;  %v418_v1 = vld [vmem:[%s171_s28] sm:$0xff]   ;;  %v419_v2 = vld [vmem:[%s171_s28 + $0x8] sm:$0xff]   ;;  %vm228_vm1 = vcmask 261120  }
  0x32   : > { %367 = vmatprep.subr.bf16.mxu0 %v489_v0  ;;  %371 = vmatprep.mubr.msk.bf16.mxu0 %vm490_vm0, %v489_v0  ;;  %v204_v3 = vld [vmem:[%s625_s0] sm:$0x1]  ;;  %p196_p8 = scmp.lt.s32.totalorder %s530_s16, 5  ;;  %vm272_vm2 = vcmask 254976  }
  0x33   : > { %368 = vmatpush3.bf16.msra.mxu0 %v418_v1 }
  0x34   : > { %369 = vmatprep.subr.bf16.mxu0 %v489_v0  ;;  %s637_s16 = smov (!%p196_p8, %s530_s16), 5 }
  0x35   : > { %s198_s30 = scalar_lea.vmem %s627_s2, %s637_s16  ;;  %s356_s4 = sshll.u32 %s637_s16, 1 }
  0x36   : > { %v357_v4 = vld [vmem:[%s198_s30] ss:$0 sm:$0xff]  ;;  %s202_s7 = scalar_lea.vmem %s628_s3, %s356_s4 }
  0x37   : > { %370 = vmatpush3.bf16.msra.mxu0 %v419_v2 }
  0x3a   : > { %372 = vmatmul.mubr.msk.bf16.vlgmr.msra.gmra.mrb[0].mxu0 %vm228_vm1, %v204_v3 }
 0x10d   : > { %v266_v5 = vpop.f32.mrb[0].mxu0 }
 0x10e   : > { %v267_v6 = vadd.f32 %v357_v4, %v266_v5  ;;  %v373_v7 = vpop.f32.mrb[1].mxu0 }
 0x10f   : > { %v269_v8 = vpop.f32.mrb[2].mxu0 }
 0x110   : > { %273 = vst.msk [vmem:[%s202_s7] sm:$0x3] %vm272_vm2, %v267_v6  ;;  %v374_v9 = vpop.f32.mrb[3].mxu0 }
 0x111 PF: > { %p13_p7 = scmp.ge.s32.totalorder %s533_s17, 8   ;;  %s632_s12 = smov %s476_s13 }
 0x112   : > { %s633_s13 = smov %s480_s14  ;;  %s634_s14 = smov %s543_s20 }
 0x113   : > { %s635_s15 = smov %s533_s17  ;;  %15 = sbr.rel (!%p13_p7) target bundleno = 3 (0x3), region = 75 }
 0x11a   :  { %293 = vsyncpa [#allocation3], 1 }
 0x11b   :  { %295 = vsyncpa [#allocation3 + $0x1], 1 }

</bundles_post_ra>
